<compile_context>
chip_gen: v5e
topology: v5e:2x2
jax: 0.10.0
libtpu: 0.0.40
codegen_flags: <defaults>
</compile_context>

<pallas_src>
import math
import jax
import jax.numpy as jnp
from jax.experimental import pallas as pl
from jax.experimental.pallas import tpu as pltpu


def _round_up(x, m):
    return ((x + m - 1) // m) * m


def _default_vmem_limit_bytes():
    """~3/4 of physical VMEM, capped at 100 MiB (v7x: ~48 MiB, v5e/v6e: ~96 MiB)."""
    try:
        cap = pltpu.get_tpu_info().vmem_capacity_bytes
    except Exception:
        cap = 128 * 1024 * 1024
    return min(int(cap * 3 // 4), 100 * 1024 * 1024)


# ----------------------------------------------------------------------------
# Kernel: out[i, j] (+)= X[i, k] @ W[k, j]  (+ bias on the first K step).
# Grid = (B tiles, H tiles, K tiles); reduction axis last; output block index
# is constant across k, so it stays resident in VMEM and acts as the f32
# accumulator — no scratch needed.
# ----------------------------------------------------------------------------
def _fused_linear_kernel(x_ref, w_ref, b_ref, o_ref):
    k = pl.program_id(2)
    partial = jnp.dot(x_ref[...], w_ref[...],
                      preferred_element_type=jnp.float32)

    @pl.when(k == 0)
    def _():
        # First K step: write dot + bias directly (no zero-fill, no RMW).
        o_ref[...] = partial + b_ref[...]

    @pl.when(k != 0)
    def _():
        o_ref[...] += partial


# ----------------------------------------------------------------------------
# One-time weight prep (hoisted out of the per-call path).
# ----------------------------------------------------------------------------
def fuse_params(params):
    """Fold the rare branch into a single (input_size, H) weight and (H,) bias."""
    w_comb = params["w_freq"]
    b_comb = params["b_freq"]
    if params.get("w_rare") is not None:
        wl_t = params["w_lin"].T                                  # (T, H)
        w_comb = jnp.concatenate([w_comb, params["w_rare"] @ wl_t], axis=0)
        b_comb = b_comb + params["b_rare"] @ wl_t
    return w_comb, b_comb


def prepare_params(params, *, input_size, tile_k=512, tile_h=512,
                   mxu_dtype=jnp.bfloat16):
    """Fuse, pad (K, H) to tile multiples, cast to the MXU dtype.  Call ONCE."""
    w_comb, b_comb = fuse_params(params)
    assert w_comb.shape[0] == input_size
    H = w_comb.shape[1]

    # H (lane / output) padded to a 128 multiple -> lane-dense output stores.
    padded_h128 = _round_up(H, 128)
    th = min(_round_up(tile_h, 128), padded_h128)
    padded_H = _round_up(H, th)

    # K (reduction) padded to a 128 multiple; tk streams W through VMEM in
    # double-buffered (tk, th) slabs.
    padded_k128 = _round_up(input_size, 128)
    tk = min(_round_up(tile_k, 128), padded_k128)
    padded_K = _round_up(input_size, tk)

    pad_k = padded_K - input_size
    pad_h = padded_H - H
    if pad_k or pad_h:
        w_comb = jnp.pad(w_comb, ((0, pad_k), (0, pad_h)))
    if pad_h:
        b_comb = jnp.pad(b_comb, (0, pad_h))

    return {
        "w_mxu": w_comb.astype(mxu_dtype),                 # (padded_K, padded_H)
        "b_f32": b_comb.reshape(1, padded_H).astype(jnp.float32),
        "H": H, "input_size": input_size,
        "padded_K": padded_K, "padded_H": padded_H,
        "tk": tk, "th": th,
        "mxu_dtype": mxu_dtype,
    }


# ----------------------------------------------------------------------------
# Per-call forward using the prepared (cached) weights.
# ----------------------------------------------------------------------------
def sparse_input_net_apply(x, prepped, *, tile_b=512):
    B, input_size = x.shape
    assert input_size == prepped["input_size"]

    padded_K = prepped["padded_K"]
    padded_H = prepped["padded_H"]
    tk, th, H = prepped["tk"], prepped["th"], prepped["H"]
    mxu_dtype = prepped["mxu_dtype"]

    # Batch tile: multiple of 16 (bf16 packs 2 rows/sublane); one big tile for
    # small batches (no forced split — single-TC chips gain nothing and it
    # doubles W re-streaming; v7x dual-TC parallelism comes from the H axis).
    pb16 = _round_up(B, 16)
    tb = min(_round_up(tile_b, 16), pb16)
    padded_B = _round_up(B, tb)

    # Cast to the MXU dtype BEFORE padding (half the pad-pass bytes); skip the
    # pad entirely when shapes already divide the tiles.
    x_mxu = x.astype(mxu_dtype)
    if padded_B != B or padded_K != input_size:
        x_mxu = jnp.pad(x_mxu, ((0, padded_B - B), (0, padded_K - input_size)))

    grid = (padded_B // tb, padded_H // th, padded_K // tk)

    out = pl.pallas_call(
        _fused_linear_kernel,
        out_shape=jax.ShapeDtypeStruct((padded_B, padded_H), jnp.float32),
        grid_spec=pltpu.PrefetchScalarGridSpec(
            num_scalar_prefetch=0,
            grid=grid,
            in_specs=[
                pl.BlockSpec((tb, tk), lambda i, j, k: (i, k)),   # X tile
                pl.BlockSpec((tk, th), lambda i, j, k: (k, j)),   # W slab
                pl.BlockSpec((1, th),  lambda i, j, k: (0, j)),   # fused bias
            ],
            out_specs=pl.BlockSpec((tb, th), lambda i, j, k: (i, j)),
        ),
        compiler_params=pltpu.CompilerParams(
            dimension_semantics=("parallel", "parallel", "arbitrary"),
            vmem_limit_bytes=_default_vmem_limit_bytes()),
    )(x_mxu, prepped["w_mxu"], prepped["b_f32"])

    return out[:B, :H]


def sparse_input_net(x, params, *, input_size_freq, tile_b=512, tile_k=512,
                     tile_h=512, mxu_dtype=jnp.bfloat16):
    """Convenience one-shot wrapper (prep + apply).  Prefer calling
    prepare_params once and sparse_input_net_apply per forward."""
    del input_size_freq  # folded into the combined weight at prep time
    prepped = prepare_params(params, input_size=x.shape[1], tile_k=tile_k,
                             tile_h=tile_h, mxu_dtype=mxu_dtype)
    return sparse_input_net_apply(x, prepped, tile_b=tile_b)


# ----------------------------------------------------------------------------
# Init + reference (mirrors SparseInputNet.init_weights / forward).
# ----------------------------------------------------------------------------
def init_params(key, *, input_size, input_size_freq, hidden, tail_hidden):
    """xavier_uniform(gain=sqrt(2)) weights, 0.1 biases for SparseLinear."""
    F = input_size_freq
    R = input_size - F
    gain = math.sqrt(2.0)  # calculate_gain('relu')

    def xavier(k, shape):
        bound = gain * math.sqrt(6.0 / (shape[0] + shape[1]))
        return jax.random.uniform(k, shape, jnp.float32, -bound, bound)

    k1, k2, k3 = jax.random.split(key, 3)
    params = {
        "w_freq": xavier(k1, (F, hidden)),            # SparseLinear weight (in, out)
        "b_freq": jnp.full((hidden,), 0.1, jnp.float32),
        "w_rare": None, "b_rare": None, "w_lin": None,
    }
    if R > 0:
        params["w_rare"] = xavier(k2, (R, tail_hidden))       # (in, out)
        params["b_rare"] = jnp.full((tail_hidden,), 0.1, jnp.float32)
        params["w_lin"] = xavier(k3, (hidden, tail_hidden))   # nn.Linear (out, in), no bias
    return params


def _reference(x, params, F):
    """Two-branch f32 reference matching the PyTorch module forward."""
    xf, xr = x[:, :F], x[:, F:]
    out = xf @ params["w_freq"] + params["b_freq"]
    if xr.shape[1] > 0:
        h = xr @ params["w_rare"] + params["b_rare"]
        out = out + h @ params["w_lin"].T
    return out


if __name__ == "__main__":
    # Small shapes consistent with the module: batch=16, input_size=256,
    # input_size_freq=192 (rare split = 64), hidden_sizes[0]=128, tail_hidden=32.
    B, INPUT_SIZE, INPUT_SIZE_FREQ, HIDDEN, TAIL = 16, 256, 192, 128, 32

    key = jax.random.PRNGKey(0)
    kx, kp = jax.random.split(key)
    x = jax.random.normal(kx, (B, INPUT_SIZE), jnp.float32)
    params = init_params(kp, input_size=INPUT_SIZE,
                         input_size_freq=INPUT_SIZE_FREQ,
                         hidden=HIDDEN, tail_hidden=TAIL)

    # Weight prep happens ONCE (fusion + padding + bf16 cast), then reused.
    prepped = prepare_params(params, input_size=INPUT_SIZE)
    out = sparse_input_net_apply(x, prepped)
    out = jax.block_until_ready(out)
    assert out.shape == (B, HIDDEN)

    # Tight check against a reference with the same bf16 operand rounding the
    # kernel uses (only accumulation-order differences remain).
    w_comb, b_comb = fuse_params(params)
    ref_bf16 = (x.astype(jnp.bfloat16).astype(jnp.float32)
                @ w_comb.astype(jnp.bfloat16).astype(jnp.float32)) + b_comb
    err_bf = float(jnp.max(jnp.abs(out - ref_bf16)))
    assert jnp.allclose(out, ref_bf16, atol=2e-3, rtol=2e-3), err_bf

    # Semantics sanity check against the pure-f32 two-branch module forward
    # (difference is only bf16 input-rounding noise).
    ref_f32 = _reference(x, params, INPUT_SIZE_FREQ)
    err_f32 = float(jnp.max(jnp.abs(out - ref_f32)))
    assert jnp.allclose(out, ref_f32, atol=1.5e-1, rtol=1.5e-1), err_f32

    print("KERNEL_OK")
</pallas_src>

<mosaic_0001>
module attributes {stable_mosaic.version = 11 : i64} {
  func.func @_fused_linear_kernel(%arg0: i32, %arg1: i32, %arg2: i32, %arg3: memref<16x256xbf16, #tpu.memory_space<vmem>>, %arg4: memref<256x128xbf16, #tpu.memory_space<vmem>>, %arg5: memref<1x128xf32, #tpu.memory_space<vmem>>, %arg6: memref<16x128xf32, #tpu.memory_space<vmem>>) attributes {dimension_semantics = [#tpu.dimension_semantics<parallel>, #tpu.dimension_semantics<parallel>, #tpu.dimension_semantics<arbitrary>], iteration_bounds = array<i64: 1, 1, 1>, scalar_prefetch = 0 : i64, scratch_operands = 0 : i64, tpu.core_type = #tpu.core_type<tc>, window_params = [{transform_indices = @transform_0, window_bounds = array<i64: 16, 256>}, {transform_indices = @transform_1, window_bounds = array<i64: 256, 128>}, {transform_indices = @transform_2, window_bounds = array<i64: 1, 128>}, {transform_indices = @transform_3, window_bounds = array<i64: 16, 128>}]} {
    %c0 = arith.constant 0 : index
    %c0_0 = arith.constant 0 : index
    %0 = vector.load %arg3[%c0, %c0_0] : memref<16x256xbf16, #tpu.memory_space<vmem>>, vector<16x256xbf16>
    %c0_1 = arith.constant 0 : index
    %c0_2 = arith.constant 0 : index
    %1 = vector.load %arg4[%c0_1, %c0_2] : memref<256x128xbf16, #tpu.memory_space<vmem>>, vector<256x128xbf16>
    %cst = arith.constant dense<0.000000e+00> : vector<16x128xf32>
    %2 = tpu.matmul %0, %1, %cst {dimension_numbers = #tpu.dot_dimension_numbers<[1], [0], [0], [1], [0, 0, 1, 1], [], []>} : vector<16x256xbf16>, vector<256x128xbf16>, vector<16x128xf32> -> vector<16x128xf32>
    %c0_i32 = arith.constant 0 : i32
    %3 = arith.cmpi eq, %arg2, %c0_i32 : i32
    %4 = arith.extui %3 : i1 to i32
    %c0_i32_3 = arith.constant 0 : i32
    %5 = arith.cmpi ne, %4, %c0_i32_3 : i32
    scf.if %5 {
      %c0_6 = arith.constant 0 : index
      %c0_7 = arith.constant 0 : index
      %9 = vector.load %arg5[%c0_6, %c0_7] : memref<1x128xf32, #tpu.memory_space<vmem>>, vector<1x128xf32>
      %10 = vector.broadcast %9 : vector<1x128xf32> to vector<16x128xf32>
      %11 = arith.addf %2, %10 : vector<16x128xf32>
      %c0_8 = arith.constant 0 : index
      %c0_9 = arith.constant 0 : index
      %12 = vector.load %arg6[%c0_8, %c0_9] : memref<16x128xf32, #tpu.memory_space<vmem>>, vector<16x128xf32>
      tpu.vector_store %arg6[%c0_8, %c0_9], %11 {strides = array<i32>} : memref<16x128xf32, #tpu.memory_space<vmem>>, vector<16x128xf32>,
    } else {
    }
    %c0_i32_4 = arith.constant 0 : i32
    %6 = arith.cmpi ne, %arg2, %c0_i32_4 : i32
    %7 = arith.extui %6 : i1 to i32
    %c0_i32_5 = arith.constant 0 : i32
    %8 = arith.cmpi ne, %7, %c0_i32_5 : i32
    scf.if %8 {
      %c0_6 = arith.constant 0 : index
      %c0_7 = arith.constant 0 : index
      %9 = vector.load %arg6[%c0_6, %c0_7] : memref<16x128xf32, #tpu.memory_space<vmem>>, vector<16x128xf32>
      %10 = arith.addf %9, %2 : vector<16x128xf32>
      %c0_8 = arith.constant 0 : index
      %c0_9 = arith.constant 0 : index
      %11 = vector.load %arg6[%c0_8, %c0_9] : memref<16x128xf32, #tpu.memory_space<vmem>>, vector<16x128xf32>
      tpu.vector_store %arg6[%c0_8, %c0_9], %10 {strides = array<i32>} : memref<16x128xf32, #tpu.memory_space<vmem>>, vector<16x128xf32>,
    } else {
    }
    return
  }
  func.func @transform_0(%arg0: i32, %arg1: i32, %arg2: i32) -> (i32, i32) {
    %c0_i32 = arith.constant 0 : i32
    return %arg0, %arg2 : i32, i32
  }
  func.func @transform_1(%arg0: i32, %arg1: i32, %arg2: i32) -> (i32, i32) {
    %c0_i32 = arith.constant 0 : i32
    return %arg2, %arg1 : i32, i32
  }
  func.func @transform_2(%arg0: i32, %arg1: i32, %arg2: i32) -> (i32, i32) {
    %c0_i32 = arith.constant 0 : i32
    %c0_i32_0 = arith.constant 0 : i32
    return %c0_i32, %arg1 : i32, i32
  }
  func.func @transform_3(%arg0: i32, %arg1: i32, %arg2: i32) -> (i32, i32) {
    %c0_i32 = arith.constant 0 : i32
    return %arg0, %arg1 : i32, i32
  }
}

</mosaic_0001>

<bundles_post_ra>
// kernel: tpu_custom_call.1
= control target key start
LH: loop header
LB: loop body
LE: loop exit
PB: predicated region body
PF: predicated region fallthrough
CT: control target
= control target key end

     0   :  { %8 = vsyncpa [#allocation3], 0  ;;  %s478_s0 = inlined_call_operand.hbm [shape: bf16[16,256], index: 0, kind: input, shape index: {}]   ;;  %s479_s1 = inlined_call_operand.hbm [shape: bf16[256,128], index: 1, kind: input, shape index: {}]   ;;  %s480_s2 = inlined_call_operand.vmem [shape: f32[1,128], index: 2, kind: input, shape index: {}]   ;;  %s481_s3 = inlined_call_operand.hbm [shape: f32[16,128], index: 3, kind: output, shape index: {}]  }
   0x1   :  { %9 = vsyncpa [#allocation6], 0 }
   0x2   :  { %10 = vsyncpa [#allocation4], 0  ;;  %s15_s14 = sshll.u32 %s478_s0, 4  ;;  %s433_s15 = smov [#allocation2]   ;;  %s16_s14 = int_to_ptr.hbm [resolvable:$true] %s15_s14 }
   0x3   :  { %s17_s16 = sshll.u32 %s433_s15, 4  ;;  %s28_s19 = sshll.u32 %s479_s1, 4  ;;  %s18_s16 = int_to_ptr.vmem [resolvable:$true] %s17_s16  ;;  %s29_s19 = int_to_ptr.hbm [resolvable:$true] %s28_s19 }
   0x4   :  { %s434_s20 = smov 128   ;;  %s435_s21 = smov 8  }
   0x5   :  { %23 = dma.hbm_to_vmem [thread:$0]  %s16_s14, 256, %s18_s16, [#allocation3], %s434_s20, %s434_s20, %s435_s21  }
   0x6   :  { %s436_s22 = smov [#allocation5]   ;;  %s437_s24 = smov 64  }
   0x7   :  { %s30_s23 = sshll.u32 %s436_s22, 4  ;;  %s438_s0 = smov 4   ;;  %s31_s23 = int_to_ptr.vmem [resolvable:$true] %s30_s23 }
   0x8   :  { %36 = dma.hbm_to_vmem [thread:$0]  %s29_s19, 2048, %s31_s23, [#allocation6], %s437_s24, %s437_s24, %s438_s0  }
   0x9   :  { %427 = dma.done.wait [#allocation3], 256  }
   0xa   :  { %428 = vsyncadd [#allocation3], 4294967040 }
   0xb   :  { %429 = dma.done.wait [#allocation6], 2048  }
   0xc   :  { %430 = vsyncadd [#allocation6], 4294965248  ;;  %v338_v0 = vld [vmem:[#allocation5 + $0x38] sm:$0xff]  ;;  %v337_v2 = vld [vmem:[#allocation5 + $0x30] sm:$0xff]  ;;  %s439_s26 = smov [#allocation7]   ;;  %s243_s30 = sshll.u32 %s481_s3, 4  ;;  %s244_s30 = int_to_ptr.hbm [resolvable:$true] %s243_s30 }
   0xd   :  { %v346_v1 = vld [vmem:[#allocation5 + $0x78] sm:$0xff]  ;;  %187 = vmatpush.bf16.msra.mxu0 %v338_v0  ;;  %v345_v3 = vld [vmem:[#allocation5 + $0x70] sm:$0xff]  ;;  %v336_v4 = vld [vmem:[#allocation5 + $0x28] sm:$0xff]  ;;  %s241_s27 = sshll.u32 %s439_s26, 4  ;;  %s242_s27 = int_to_ptr.vmem [resolvable:$true] %s241_s27 }
   0xe   :  { %201 = vmatpush.bf16.msra.mxu1 %v346_v1  ;;  %v344_v5 = vld [vmem:[#allocation5 + $0x68] sm:$0xff]  ;;  %v335_v6 = vld [vmem:[#allocation5 + $0x20] sm:$0xff]  ;;  %v334_v8 = vld [vmem:[#allocation5 + $0x18] sm:$0xff] }
   0xf   :  { %v343_v7 = vld [vmem:[#allocation5 + $0x60] sm:$0xff]  ;;  %v342_v9 = vld [vmem:[#allocation5 + $0x58] sm:$0xff]  ;;  %v333_v10 = vld [vmem:[#allocation5 + $0x10] sm:$0xff] }
  0x10   :  { %v341_v11 = vld [vmem:[#allocation5 + $0x50] sm:$0xff]  ;;  %v332_v12 = vld [vmem:[#allocation5 + $0x8] sm:$0xff]  ;;  %v331_v14 = vld [vmem:[#allocation5] sm:$0xff] }
  0x11   :  { %188 = vmatpush.bf16.msra.mxu0 %v337_v2  ;;  %v340_v13 = vld [vmem:[#allocation5 + $0x48] sm:$0xff]  ;;  %v339_v15 = vld [vmem:[#allocation5 + $0x40] sm:$0xff]  ;;  %v259_v16 = vld [vmem:[#allocation2] sm:$0xf] }
  0x12   :  { %202 = vmatpush.bf16.msra.mxu1 %v345_v3  ;;  %v330_v17 = vld [vmem:[#allocation2 + $0x4] sm:$0xf0]  ;;  %v329_v18 = vld [vmem:[#allocation2 + $0x4] sm:$0xf]  ;;  %v261_v19 = vld [vmem:[#allocation2 + $0x8] sm:$0xf0] }
  0x13   :  { %v260_v20 = vor.u32 %v330_v17, %v259_v16  ;;  %v264_v21 = vor.u32 %v329_v18, %v261_v19  ;;  %v354_v22 = vld [vmem:[%s480_s2] ss:$0 sm:$0xff] }
  0x15   :  { %189 = vmatpush.bf16.msra.mxu0 %v336_v4 }
  0x16   :  { %203 = vmatpush.bf16.msra.mxu1 %v344_v5 }
  0x19   :  { %190 = vmatpush.bf16.msra.mxu0 %v335_v6 }
  0x1a   :  { %204 = vmatpush.bf16.msra.mxu1 %v343_v7 }
  0x1d   :  { %191 = vmatpush.bf16.msra.mxu0 %v334_v8 }
  0x1e   :  { %205 = vmatpush.bf16.msra.mxu1 %v342_v9 }
  0x21   :  { %192 = vmatpush.bf16.msra.mxu0 %v333_v10 }
  0x22   :  { %206 = vmatpush.bf16.msra.mxu1 %v341_v11 }
  0x25   :  { %193 = vmatpush.bf16.msra.mxu0 %v332_v12 }
  0x26   :  { %207 = vmatpush.bf16.msra.mxu1 %v340_v13 }
  0x29   :  { %194 = vmatpush.bf16.msra.mxu0 %v331_v14 }
  0x2a   :  { %208 = vmatpush.bf16.msra.mxu1 %v339_v15 }
  0x2c   :  { %195 = vmatmul.bf16.vlgmr.msra.gmra.mxu0 %v260_v20 }
  0x2d   :  { %209 = vmatmul.bf16.vlgmr.msra.gmra.mxu1 %v264_v21 }
  0xa9   :  { %v196_v23 = vpop.f32.mrf.mxu0 }
  0xaa   :  { %v210_v24 = vpop.f32.mrf.mxu1 }
  0xab   :  { %v211_v25 = vadd.f32 %v210_v24, %v196_v23 }
  0xad   :  { %v223_v26 = vadd.f32 %v354_v22, %v211_v25 }
  0xaf   :  { %225 = vst [vmem:[#allocation7] sm:$0xff] %v223_v26 }
  0xb1   :  { %v198_v27 = vpop.f32.mrf.mxu0 }
  0xb2   :  { %v212_v28 = vpop.f32.mrf.mxu1 }
  0xb3   :  { %v213_v29 = vadd.f32 %v212_v28, %v198_v27 }
  0xb5   :  { %v224_v30 = vadd.f32 %v354_v22, %v213_v29 }
  0xb7   :  { %226 = vst [vmem:[#allocation7 + $0x8] sm:$0xff] %v224_v30 }
  0xb8   :  { %249 = dma.vmem_to_hbm [thread:$0]  %s242_s27, 256, %s244_s30, [#allocation4], %s434_s20, %s434_s20, %s435_s21  }
  0xb9   :  { %431 = dma.done.wait [#allocation4], 256  }
  0xba   :  { %432 = vsyncadd [#allocation4], 4294967040 }
  0xbb   :  { %254 = vsyncpa [#allocation3], 1 }
  0xbc   :  { %255 = vsyncpa [#allocation6], 1 }
  0xbd   :  { %256 = vsyncpa [#allocation4], 1 }

</bundles_post_ra>
